<compile_context>
chip_gen: v7x
topology: tpu7x:2x2x1
jax: 0.10.0
libtpu: 0.0.40
codegen_flags: <defaults>
</compile_context>

<pallas_src>
import jax
import jax.numpy as jnp
from jax.experimental import pallas as pl
from jax.experimental.pallas import tpu as pltpu

BN_EPS = 1e-5


def _round_up(a, b):
    return (a + b - 1) // b * b


# ----------------------------------------------------------------------------
# Pass 1: single-GEMM conv tile -> per-tile BatchNorm partial sums only.
#   w_ref  : (Cout_p, K)   bf16  resident flattened weight (K = k * Cin2)
#   x_ref  : (K, TN)       bf16  tap-packed input columns
#   s1/s2  : (1, Cout_p, 1) f32  per-tile sum / sum-of-squares per out channel
# ----------------------------------------------------------------------------
def _stats_kernel(w_ref, x_ref, s1_ref, s2_ref):
    y = jnp.dot(w_ref[...], x_ref[...], preferred_element_type=jnp.float32)
    s1_ref[...] = jnp.sum(y, axis=1, keepdims=True)[None]      # cross-lane (XLU) reduce
    s2_ref[...] = jnp.sum(y * y, axis=1, keepdims=True)[None]


# ----------------------------------------------------------------------------
# Pass 2: recompute the GEMM tile and fuse BatchNorm (folded scale/shift) + ReLU.
#   sc/sh  : (Cout_p, 1) f32 per-channel scale / shift (broadcast along lanes)
#   o_ref  : (Cout_p, TN) f32 lane-dense output tile
# ----------------------------------------------------------------------------
def _apply_kernel(w_ref, x_ref, sc_ref, sh_ref, o_ref):
    y = jnp.dot(w_ref[...], x_ref[...], preferred_element_type=jnp.float32)
    o_ref[...] = jnp.maximum(y * sc_ref[...] + sh_ref[...], 0.0).astype(o_ref.dtype)


# ----------------------------------------------------------------------------
# Conv(k,1) + training-mode BatchNorm + ReLU for G branches sharing (K, N).
# ----------------------------------------------------------------------------
def _conv_bn_relu_group(xk_list, w_list, gamma_list, beta_list):
    # xk_list[g]: (K, N) f32 tap-packed input; w_list[g]: (Cout_g, K) f32.
    G = len(xk_list)
    K, N = xk_list[0].shape
    for xk_g in xk_list:
        assert xk_g.shape == (K, N)
    Cout_p = _round_up(max(w.shape[0] for w in w_list), 8)   # sublane pad only

    # ---- generation-aware tile sizing (v5e/v6e: 128 MiB VMEM, v7x: 64 MiB) ----
    try:
        vmem_cap = int(getattr(pltpu.get_tpu_info(), "vmem_capacity_bytes",
                               64 * 1024 * 1024))
    except Exception:
        vmem_cap = 64 * 1024 * 1024
    vmem_limit = int(min(100 * 1024 * 1024, vmem_cap * 3 // 4))
    tile_budget = vmem_cap // 4
    # double-buffered bf16 input + double-buffered f32 output + f32 acc temp
    bytes_per_col = 2 * K * 2 + 2 * Cout_p * 4 + Cout_p * 4
    tn = max(512, tile_budget // max(bytes_per_col, 1)) // 128 * 128
    N128 = _round_up(N, 128)
    if G == 1 and N128 > 128:
        # no branch axis -> keep >= 2 tiles so the parallel axis can split
        # across TensorCores (v7x megacore).
        tn = min(tn, ((N128 // 128 + 1) // 2) * 128)
    TN = max(128, min(tn, N128))
    N_pad = _round_up(N, TN)
    n_tiles = N_pad // TN

    # ---- pad & stack branches (zero pad -> zero conv output -> no BN impact) --
    xks, ws, gs, bs, couts = [], [], [], [], []
    for xk_g, w_g, g_g, b_g in zip(xk_list, w_list, gamma_list, beta_list):
        cout = w_g.shape[0]
        couts.append(cout)
        xks.append(jnp.pad(xk_g, ((0, 0), (0, N_pad - N))).astype(jnp.bfloat16))
        ws.append(jnp.pad(w_g, ((0, Cout_p - cout), (0, 0))).astype(jnp.bfloat16))
        gs.append(jnp.pad(g_g.astype(jnp.float32), (0, Cout_p - cout)))
        bs.append(jnp.pad(b_g.astype(jnp.float32), (0, Cout_p - cout)))
    xk = jnp.stack(xks)        # (G, K, N_pad)    bf16
    w = jnp.stack(ws)          # (G, Cout_p, K)   bf16
    gamma = jnp.stack(gs)      # (G, Cout_p)      f32
    beta = jnp.stack(bs)

    cparams = pltpu.CompilerParams(
        dimension_semantics=("parallel", "parallel"),
        vmem_limit_bytes=vmem_limit)

    # ---- pass 1: per-tile BN partial sums (no conv intermediate written) -----
    s1_t, s2_t = pl.pallas_call(
        _stats_kernel,
        out_shape=(jax.ShapeDtypeStruct((G, n_tiles, Cout_p, 1), jnp.float32),
                   jax.ShapeDtypeStruct((G, n_tiles, Cout_p, 1), jnp.float32)),
        grid=(G, n_tiles),
        in_specs=[pl.BlockSpec((None, Cout_p, K), lambda g, n: (g, 0, 0)),
                  pl.BlockSpec((None, K, TN), lambda g, n: (g, 0, n))],
        out_specs=(pl.BlockSpec((None, 1, Cout_p, 1), lambda g, n: (g, n, 0, 0)),
                   pl.BlockSpec((None, 1, Cout_p, 1), lambda g, n: (g, n, 0, 0))),
        compiler_params=cparams,
    )(w, xk)

    # ---- tiny O(Cout) reduction + BN folding (f32, outside the kernels) ------
    # NOTE: single-pass var = E[x^2] - E[x]^2 in f32; adequate at this scale.
    count = float(N)                                  # true columns per channel
    s1 = jnp.sum(s1_t[..., 0], axis=1)                # (G, Cout_p)
    s2 = jnp.sum(s2_t[..., 0], axis=1)
    mean = s1 / count
    var = jnp.maximum(s2 / count - mean * mean, 0.0)  # biased var (training BN)
    rstd = jax.lax.rsqrt(var + BN_EPS)
    scale = (gamma * rstd)[..., None]                 # (G, Cout_p, 1)
    shift = (beta - mean * gamma * rstd)[..., None]

    # ---- pass 2: recompute conv tile, fuse normalize + ReLU ------------------
    y = pl.pallas_call(
        _apply_kernel,
        out_shape=jax.ShapeDtypeStruct((G, Cout_p, N_pad), jnp.float32),
        grid=(G, n_tiles),
        in_specs=[pl.BlockSpec((None, Cout_p, K), lambda g, n: (g, 0, 0)),
                  pl.BlockSpec((None, K, TN), lambda g, n: (g, 0, n)),
                  pl.BlockSpec((None, Cout_p, 1), lambda g, n: (g, 0, 0)),
                  pl.BlockSpec((None, Cout_p, 1), lambda g, n: (g, 0, 0))],
        out_specs=pl.BlockSpec((None, Cout_p, TN), lambda g, n: (g, 0, n)),
        compiler_params=cparams,
    )(w, xk, scale, shift)

    return [y[g, :couts[g], :N] for g in range(G)]


# ----------------------------------------------------------------------------
# Branch preparation: rfft + Re/Im packing + reflect pad + tap packing.
# ----------------------------------------------------------------------------
def _branch_pack(x, w, k):
    # x: (B, C, A, D) — conv runs along A, rfft along D (last axis).
    B, C, A, D = x.shape
    pad = k // 2
    ff = jnp.fft.rfft(x.astype(jnp.float32), axis=-1, norm="ortho")    # (B,C,A,Df)
    Df = ff.shape[-1]
    packed = jnp.stack([jnp.real(ff), jnp.imag(ff)], axis=2)           # (B,C,2,A,Df)
    packed = packed.reshape(B, 2 * C, A, Df)                           # ch 2c=Re, 2c+1=Im
    xt = jnp.transpose(packed, (0, 3, 1, 2))                           # (B,Df,Cin2,A)
    xt = jnp.pad(xt, ((0, 0), (0, 0), (0, 0), (pad, pad)), mode="reflect")
    taps = jnp.stack([xt[..., d:d + A] for d in range(k)], axis=2)     # (B,Df,k,Cin2,A)
    Cin2 = 2 * C
    K = k * Cin2
    xk = taps.reshape(B * Df, K, A)
    xk = jnp.transpose(xk, (1, 0, 2)).reshape(K, B * Df * A)           # (K, N), row = d*Cin2+c
    wflat = jnp.transpose(w[..., 0], (0, 2, 1)).reshape(w.shape[0], K)  # (Cout2, K), col = d*Cin2+c
    return xk, wflat, (B, Df, A, D)


def _branch_unpack(y, info, cout2):
    # y: (Cout2, N) f32 with column index n = (b*Df + df)*A + a.
    B, Df, A, D = info
    y = y.reshape(cout2, B, Df, A)
    y = jnp.transpose(y, (1, 0, 3, 2))                                 # (B, Cout2, A, Df)
    co = cout2 // 2
    yc = y.reshape(B, co, 2, A, Df)
    comp = jax.lax.complex(yc[:, :, 0], yc[:, :, 1])
    return jnp.fft.irfft(comp, n=D, axis=-1, norm="ortho")             # (B, Co, A, D)


def forward_pallas(x, params):
    k = params["kernel_size"]
    xk_r, w_r, info_r = _branch_pack(x, params["row_w"], k)
    xk_c, w_c, info_c = _branch_pack(jnp.transpose(x, (0, 1, 3, 2)), params["col_w"], k)

    if xk_r.shape == xk_c.shape:
        # H == W: batch both branches into one pair of pallas_calls (G = 2).
        y_r, y_c = _conv_bn_relu_group(
            [xk_r, xk_c], [w_r, w_c],
            [params["row_gamma"], params["col_gamma"]],
            [params["row_beta"], params["col_beta"]])
    else:
        (y_r,) = _conv_bn_relu_group([xk_r], [w_r],
                                     [params["row_gamma"]], [params["row_beta"]])
        (y_c,) = _conv_bn_relu_group([xk_c], [w_c],
                                     [params["col_gamma"]], [params["col_beta"]])

    rowwise = _branch_unpack(y_r, info_r, w_r.shape[0])
    colwise = _branch_unpack(y_c, info_c, w_c.shape[0])
    colwise = jnp.transpose(colwise, (0, 1, 3, 2))
    return jnp.concatenate([rowwise, colwise], axis=1)


# ----------------------------------------------------------------------------
# Pure-JAX reference (same math via lax.conv). Conv inputs/weights are cast to
# bf16 like the kernel's MXU path; FFT/BN/ReLU/iFFT stay f32.
# ----------------------------------------------------------------------------
def _reference_branch(x, w, gamma, beta, k):
    B, C, A, D = x.shape
    ff = jnp.fft.rfft(x.astype(jnp.float32), axis=-1, norm="ortho")
    packed = jnp.stack([jnp.real(ff), jnp.imag(ff)], axis=2).reshape(
        B, 2 * C, A, ff.shape[-1])
    pad = k // 2
    xp = jnp.pad(packed, ((0, 0), (0, 0), (pad, pad), (0, 0)), mode="reflect")
    y = jax.lax.conv_general_dilated(
        xp.astype(jnp.bfloat16), w.astype(jnp.bfloat16),
        window_strides=(1, 1), padding=((0, 0), (0, 0)),
        dimension_numbers=("NCHW", "OIHW", "NCHW"),
        preferred_element_type=jnp.float32)
    mean = jnp.mean(y, axis=(0, 2, 3), keepdims=True)
    var = jnp.mean(jnp.square(y - mean), axis=(0, 2, 3), keepdims=True)
    y = (y - mean) * jax.lax.rsqrt(var + BN_EPS) * gamma[None, :, None, None] \
        + beta[None, :, None, None]
    y = jnp.maximum(y, 0.0)
    Co = y.shape[1] // 2
    yc = y.reshape(B, Co, 2, A, y.shape[-1])
    comp = jax.lax.complex(yc[:, :, 0], yc[:, :, 1])
    return jnp.fft.irfft(comp, n=D, axis=-1, norm="ortho")


def forward_reference(x, params):
    k = params["kernel_size"]
    rowwise = _reference_branch(x, params["row_w"], params["row_gamma"],
                                params["row_beta"], k)
    col_in = jnp.transpose(x, (0, 1, 3, 2))
    colwise = _reference_branch(col_in, params["col_w"], params["col_gamma"],
                                params["col_beta"], k)
    colwise = jnp.transpose(colwise, (0, 1, 3, 2))
    return jnp.concatenate([rowwise, colwise], axis=1)


# ----------------------------------------------------------------------------
# Parameter construction (mirrors SeparableFourierUnit.__init__ shapes).
# ----------------------------------------------------------------------------
def build_params(key, in_channels, out_channels, kernel_size=3):
    row_out = out_channels // 2
    col_out = out_channels - row_out
    cin2 = in_channels * 2
    fan_in = cin2 * kernel_size * 1
    bound = 1.0 / (fan_in ** 0.5)
    k1, k2, k3, k4, k5, k6 = jax.random.split(key, 6)
    return dict(
        kernel_size=kernel_size,
        row_w=jax.random.uniform(k1, (row_out * 2, cin2, kernel_size, 1),
                                 jnp.float32, -bound, bound),
        col_w=jax.random.uniform(k2, (col_out * 2, cin2, kernel_size, 1),
                                 jnp.float32, -bound, bound),
        row_gamma=1.0 + 0.1 * jax.random.normal(k3, (row_out * 2,), jnp.float32),
        row_beta=0.1 * jax.random.normal(k4, (row_out * 2,), jnp.float32),
        col_gamma=1.0 + 0.1 * jax.random.normal(k5, (col_out * 2,), jnp.float32),
        col_beta=0.1 * jax.random.normal(k6, (col_out * 2,), jnp.float32),
    )


# ----------------------------------------------------------------------------
if __name__ == "__main__":
    B, C, H, W = 2, 4, 16, 16
    OUT_CH, KSIZE = 6, 3

    key = jax.random.PRNGKey(0)
    k_x, k_p = jax.random.split(key)
    x = jax.random.normal(k_x, (B, C, H, W), jnp.float32)   # NCHW, like PyTorch
    params = build_params(k_p, C, OUT_CH, KSIZE)

    fwd = jax.jit(lambda a: forward_pallas(a, params))
    out = jax.block_until_ready(fwd(x))

    ref = jax.block_until_ready(forward_reference(x, params))
    assert out.shape == ref.shape == (B, OUT_CH, H, W), (out.shape, ref.shape)
    assert bool(jnp.all(jnp.isfinite(out)))
    max_err = float(jnp.max(jnp.abs(out - ref)))
    assert max_err < 5e-3, max_err

    print("KERNEL_OK")
</pallas_src>

<mosaic_0001>
module attributes {stable_mosaic.version = 11 : i64} {
  func.func @_apply_kernel(%arg0: i32, %arg1: i32, %arg2: memref<1x8x24xbf16, #tpu.memory_space<vmem>>, %arg3: memref<1x24x384xbf16, #tpu.memory_space<vmem>>, %arg4: memref<1x8x1xf32, #tpu.memory_space<vmem>>, %arg5: memref<1x8x1xf32, #tpu.memory_space<vmem>>, %arg6: memref<1x8x384xf32, #tpu.memory_space<vmem>>) attributes {dimension_semantics = [#tpu.dimension_semantics<parallel>, #tpu.dimension_semantics<parallel>], iteration_bounds = array<i64: 2, 1>, scalar_prefetch = 0 : i64, scratch_operands = 0 : i64, tpu.core_type = #tpu.core_type<tc>, window_params = [{transform_indices = @transform_0, window_bounds = array<i64: 1, 8, 24>}, {transform_indices = @transform_1, window_bounds = array<i64: 1, 24, 384>}, {transform_indices = @transform_2, window_bounds = array<i64: 1, 8, 1>}, {transform_indices = @transform_3, window_bounds = array<i64: 1, 8, 1>}, {transform_indices = @transform_4, window_bounds = array<i64: 1, 8, 384>}]} {
    %c0 = arith.constant 0 : index
    %c0_0 = arith.constant 0 : index
    %c0_1 = arith.constant 0 : index
    %0 = vector.load %arg2[%c0, %c0_0, %c0_1] : memref<1x8x24xbf16, #tpu.memory_space<vmem>>, vector<1x8x24xbf16>
    %1 = vector.shape_cast %0 : vector<1x8x24xbf16> to vector<8x24xbf16>
    %c0_2 = arith.constant 0 : index
    %c0_3 = arith.constant 0 : index
    %c0_4 = arith.constant 0 : index
    %2 = vector.load %arg3[%c0_2, %c0_3, %c0_4] : memref<1x24x384xbf16, #tpu.memory_space<vmem>>, vector<1x24x384xbf16>
    %3 = vector.shape_cast %2 : vector<1x24x384xbf16> to vector<24x384xbf16>
    %cst = arith.constant dense<0.000000e+00> : vector<8x384xf32>
    %4 = tpu.matmul %1, %3, %cst {dimension_numbers = #tpu.dot_dimension_numbers<[1], [0], [0], [1], [0, 0, 1, 1], [], []>} : vector<8x24xbf16>, vector<24x384xbf16>, vector<8x384xf32> -> vector<8x384xf32>
    %c0_5 = arith.constant 0 : index
    %c0_6 = arith.constant 0 : index
    %c0_7 = arith.constant 0 : index
    %5 = vector.load %arg4[%c0_5, %c0_6, %c0_7] : memref<1x8x1xf32, #tpu.memory_space<vmem>>, vector<1x8x1xf32>
    %6 = vector.shape_cast %5 : vector<1x8x1xf32> to vector<8x1xf32>
    %7 = vector.broadcast %6 : vector<8x1xf32> to vector<8x384xf32>
    %8 = arith.mulf %4, %7 : vector<8x384xf32>
    %c0_8 = arith.constant 0 : index
    %c0_9 = arith.constant 0 : index
    %c0_10 = arith.constant 0 : index
    %9 = vector.load %arg5[%c0_8, %c0_9, %c0_10] : memref<1x8x1xf32, #tpu.memory_space<vmem>>, vector<1x8x1xf32>
    %10 = vector.shape_cast %9 : vector<1x8x1xf32> to vector<8x1xf32>
    %11 = vector.broadcast %10 : vector<8x1xf32> to vector<8x384xf32>
    %12 = arith.addf %8, %11 : vector<8x384xf32>
    %cst_11 = arith.constant 0.000000e+00 : f32
    %13 = vector.broadcast %cst_11 : f32 to vector<8x384xf32>
    %14 = arith.maximumf %12, %13 : vector<8x384xf32>
    %c0_12 = arith.constant 0 : index
    %c0_13 = arith.constant 0 : index
    %c0_14 = arith.constant 0 : index
    %15 = vector.load %arg6[%c0_12, %c0_13, %c0_14] : memref<1x8x384xf32, #tpu.memory_space<vmem>>, vector<1x8x384xf32>
    %16 = vector.shape_cast %15 : vector<1x8x384xf32> to vector<8x384xf32>
    %17 = vector.shape_cast %14 : vector<8x384xf32> to vector<1x8x384xf32>
    tpu.vector_store %arg6[%c0_12, %c0_13, %c0_14], %17 {strides = array<i32>} : memref<1x8x384xf32, #tpu.memory_space<vmem>>, vector<1x8x384xf32>,
    return
  }
  func.func @transform_0(%arg0: i32, %arg1: i32) -> (i32, i32, i32) {
    %c0_i32 = arith.constant 0 : i32
    %c0_i32_0 = arith.constant 0 : i32
    %c0_i32_1 = arith.constant 0 : i32
    return %arg0, %c0_i32, %c0_i32_0 : i32, i32, i32
  }
  func.func @transform_1(%arg0: i32, %arg1: i32) -> (i32, i32, i32) {
    %c0_i32 = arith.constant 0 : i32
    %c0_i32_0 = arith.constant 0 : i32
    return %arg0, %c0_i32, %arg1 : i32, i32, i32
  }
  func.func @transform_2(%arg0: i32, %arg1: i32) -> (i32, i32, i32) {
    %c0_i32 = arith.constant 0 : i32
    %c0_i32_0 = arith.constant 0 : i32
    %c0_i32_1 = arith.constant 0 : i32
    return %arg0, %c0_i32, %c0_i32_0 : i32, i32, i32
  }
  func.func @transform_3(%arg0: i32, %arg1: i32) -> (i32, i32, i32) {
    %c0_i32 = arith.constant 0 : i32
    %c0_i32_0 = arith.constant 0 : i32
    %c0_i32_1 = arith.constant 0 : i32
    return %arg0, %c0_i32, %c0_i32_0 : i32, i32, i32
  }
  func.func @transform_4(%arg0: i32, %arg1: i32) -> (i32, i32, i32) {
    %c0_i32 = arith.constant 0 : i32
    %c0_i32_0 = arith.constant 0 : i32
    return %arg0, %c0_i32, %arg1 : i32, i32, i32
  }
}

module attributes {stable_mosaic.version = 11 : i64} {
  func.func @_stats_kernel(%arg0: i32, %arg1: i32, %arg2: memref<1x8x24xbf16, #tpu.memory_space<vmem>>, %arg3: memref<1x24x384xbf16, #tpu.memory_space<vmem>>, %arg4: memref<1x1x8x1xf32, #tpu.memory_space<vmem>>, %arg5: memref<1x1x8x1xf32, #tpu.memory_space<vmem>>) attributes {dimension_semantics = [#tpu.dimension_semantics<parallel>, #tpu.dimension_semantics<parallel>], iteration_bounds = array<i64: 2, 1>, scalar_prefetch = 0 : i64, scratch_operands = 0 : i64, tpu.core_type = #tpu.core_type<tc>, window_params = [{transform_indices = @transform_0, window_bounds = array<i64: 1, 8, 24>}, {transform_indices = @transform_1, window_bounds = array<i64: 1, 24, 384>}, {transform_indices = @transform_2, window_bounds = array<i64: 1, 1, 8, 1>}, {transform_indices = @transform_3, window_bounds = array<i64: 1, 1, 8, 1>}]} {
    %c0 = arith.constant 0 : index
    %c0_0 = arith.constant 0 : index
    %c0_1 = arith.constant 0 : index
    %0 = vector.load %arg2[%c0, %c0_0, %c0_1] : memref<1x8x24xbf16, #tpu.memory_space<vmem>>, vector<1x8x24xbf16>
    %1 = vector.shape_cast %0 : vector<1x8x24xbf16> to vector<8x24xbf16>
    %c0_2 = arith.constant 0 : index
    %c0_3 = arith.constant 0 : index
    %c0_4 = arith.constant 0 : index
    %2 = vector.load %arg3[%c0_2, %c0_3, %c0_4] : memref<1x24x384xbf16, #tpu.memory_space<vmem>>, vector<1x24x384xbf16>
    %3 = vector.shape_cast %2 : vector<1x24x384xbf16> to vector<24x384xbf16>
    %cst = arith.constant dense<0.000000e+00> : vector<8x384xf32>
    %4 = tpu.matmul %1, %3, %cst {dimension_numbers = #tpu.dot_dimension_numbers<[1], [0], [0], [1], [0, 0, 1, 1], [], []>} : vector<8x24xbf16>, vector<24x384xbf16>, vector<8x384xf32> -> vector<8x384xf32>
    %cst_5 = arith.constant dense<0.000000e+00> : vector<8xf32>
    %5 = vector.multi_reduction <add>, %4, %cst_5 [1] : vector<8x384xf32> to vector<8xf32>
    %6 = vector.shape_cast %5 : vector<8xf32> to vector<8x1xf32>
    %7 = vector.shape_cast %6 : vector<8x1xf32> to vector<1x8x1xf32>
    %c0_6 = arith.constant 0 : index
    %c0_7 = arith.constant 0 : index
    %c0_8 = arith.constant 0 : index
    %c0_9 = arith.constant 0 : index
    %8 = vector.load %arg4[%c0_6, %c0_7, %c0_8, %c0_9] : memref<1x1x8x1xf32, #tpu.memory_space<vmem>>, vector<1x1x8x1xf32>
    %9 = vector.shape_cast %8 : vector<1x1x8x1xf32> to vector<1x8x1xf32>
    %10 = vector.shape_cast %7 : vector<1x8x1xf32> to vector<1x1x8x1xf32>
    tpu.vector_store %arg4[%c0_6, %c0_7, %c0_8, %c0_9], %10 {strides = array<i32>} : memref<1x1x8x1xf32, #tpu.memory_space<vmem>>, vector<1x1x8x1xf32>,
    %11 = arith.mulf %4, %4 : vector<8x384xf32>
    %cst_10 = arith.constant dense<0.000000e+00> : vector<8xf32>
    %12 = vector.multi_reduction <add>, %11, %cst_10 [1] : vector<8x384xf32> to vector<8xf32>
    %13 = vector.shape_cast %12 : vector<8xf32> to vector<8x1xf32>
    %14 = vector.shape_cast %13 : vector<8x1xf32> to vector<1x8x1xf32>
    %c0_11 = arith.constant 0 : index
    %c0_12 = arith.constant 0 : index
    %c0_13 = arith.constant 0 : index
    %c0_14 = arith.constant 0 : index
    %15 = vector.load %arg5[%c0_11, %c0_12, %c0_13, %c0_14] : memref<1x1x8x1xf32, #tpu.memory_space<vmem>>, vector<1x1x8x1xf32>
    %16 = vector.shape_cast %15 : vector<1x1x8x1xf32> to vector<1x8x1xf32>
    %17 = vector.shape_cast %14 : vector<1x8x1xf32> to vector<1x1x8x1xf32>
    tpu.vector_store %arg5[%c0_11, %c0_12, %c0_13, %c0_14], %17 {strides = array<i32>} : memref<1x1x8x1xf32, #tpu.memory_space<vmem>>, vector<1x1x8x1xf32>,
    return
  }
  func.func @transform_0(%arg0: i32, %arg1: i32) -> (i32, i32, i32) {
    %c0_i32 = arith.constant 0 : i32
    %c0_i32_0 = arith.constant 0 : i32
    %c0_i32_1 = arith.constant 0 : i32
    return %arg0, %c0_i32, %c0_i32_0 : i32, i32, i32
  }
  func.func @transform_1(%arg0: i32, %arg1: i32) -> (i32, i32, i32) {
    %c0_i32 = arith.constant 0 : i32
    %c0_i32_0 = arith.constant 0 : i32
    return %arg0, %c0_i32, %arg1 : i32, i32, i32
  }
  func.func @transform_2(%arg0: i32, %arg1: i32) -> (i32, i32, i32, i32) {
    %c0_i32 = arith.constant 0 : i32
    %c0_i32_0 = arith.constant 0 : i32
    %c0_i32_1 = arith.constant 0 : i32
    return %arg0, %arg1, %c0_i32, %c0_i32_0 : i32, i32, i32, i32
  }
  func.func @transform_3(%arg0: i32, %arg1: i32) -> (i32, i32, i32, i32) {
    %c0_i32 = arith.constant 0 : i32
    %c0_i32_0 = arith.constant 0 : i32
    %c0_i32_1 = arith.constant 0 : i32
    return %arg0, %arg1, %c0_i32, %c0_i32_0 : i32, i32, i32, i32
  }
}

</mosaic_0001>

<bundles_post_ra>
// kernel: squeeze.10
= control target key start
LH: loop header
LB: loop body
LE: loop exit
PB: predicated region body
PF: predicated region fallthrough
CT: control target
= control target key end

     0   :  { %vm70_vm0 = vcmask 1047557   ;;  %vm48_vm1 = vcmask 1045507   ;;  %s51_s6 = smov 192  ;;  %vm53_vm2 = vcmask 1047558   ;;  %s301_s15 = smov 112   ;;  %vm3_vm3 = vcmask 130048   ;;  %s607_s0 = inlined_call_operand.vmem [shape: f32[1,6,288], index: 0, kind: input, shape index: {}]   ;;  %s608_s1 = inlined_call_operand.vmem [shape: f32[6,2,9,16], index: 1, kind: output, shape index: {}]  }
   0x1   :  { %v243_v0 = vld.sshfl [vmem:[%s607_s0 + $0x3] sm:$0xff pattern:$0x99991f80]   ;;  %v244_v1 = vld.sshfl [vmem:[%s607_s0 + $0x5] sm:$0xff pattern:$0x80eeeeee]  }
   0x2   :  { %v71_v2 = vsel %vm70_vm0, %v244_v1, %v243_v0  ;;  %v249_v3 = vld [vmem:[%s607_s0 + $0x14] sm:$0x3]   ;;  %v45_v4 = vld [vmem:[%s607_s0] ss:$8 sm:$0x7]   ;;  %s302_s22 = smov 96  }
   0x3   :  { %72 = vrot.lane.b32.xlu0 %v71_v2, %s301_s15  ;;  %85 = vrot.lane.b32.xlu1 %v249_v3, %s301_s15  ;;  %v237_v5 = vld [vmem:[%s607_s0 - $0x17] ss:$8 sm:$0x38]   ;;  %v256_v10 = vld.sshfl [vmem:[%s607_s0 + $0x4] sm:$0xff pattern:$0x99999180]  }
   0x4   :  { %v49_v6 = vsel %vm48_vm1, %v237_v5, %v45_v4  ;;  %v238_v7 = vld [vmem:[%s607_s0 - $0x2e] ss:$8 sm:%s51_s6]   ;;  %s303_s25 = smov 80   ;;  %s304_s26 = smov 64  }
   0x5   :  { %v92_v8 = vld.sshfl [vmem:[%s607_s0] sm:$0xff pattern:$0xb3a29180]   ;;  %v54_v9 = vsel %vm53_vm2, %v238_v7, %v49_v6  ;;  %v230_v13 = vld [vmem:[%s607_s0 + $0x10] sm:$0x3f]   ;;  %s306_s10 = smov 32  }
   0x6   :  { %v2_v11 = vld [vmem:[%s607_s0] sm:$0x3f]   ;;  %v223_v12 = vld [vmem:[%s607_s0 + $0x8] sm:$0x3f]   ;;  %231 = vst.msk [vmem:[%s608_s1 + $0x17] sm:$0x1] %vm3_vm3, %v230_v13  }
   0x7   :  { %55 = vrot.lane.b32.xlu0 %v54_v9, %s301_s15  ;;  %93 = vrot.lane.b32.xlu1 %v92_v8, %s302_s22  ;;  %4 = vst.msk [vmem:[%s608_s1] sm:$0x1] %vm3_vm3, %v2_v11   ;;  %218 = vst.msk [vmem:[%s608_s1 + $0x1f] sm:$0x2] %vm3_vm3, %v2_v11   ;;  %s307_s11 = smov 16  }
   0x8   :  { %219 = vst.msk [vmem:[%s608_s1 + $0x3e] sm:$0x4] %vm3_vm3, %v2_v11   ;;  %220 = vst.msk [vmem:[%s608_s1 + $0x5d] sm:$0x8] %vm3_vm3, %v2_v11  }
   0x9   :  { %221 = vst.msk [vmem:[%s608_s1 + $0x7c] sm:$0x10] %vm3_vm3, %v2_v11   ;;  %222 = vst.msk [vmem:[%s608_s1 + $0x9b] sm:$0x20] %vm3_vm3, %v2_v11  }
   0xa   :  { %224 = vst.msk [vmem:[%s608_s1 + $0x8] sm:$0x1] %vm3_vm3, %v223_v12   ;;  %225 = vst.msk [vmem:[%s608_s1 + $0x27] sm:$0x2] %vm3_vm3, %v223_v12  }
   0xb   :  { %106 = vrot.lane.b32.xlu0 %v256_v10, %s302_s22  ;;  %114 = vrot.lane.b32.xlu1 %v92_v8, %s303_s25  ;;  %226 = vst.msk [vmem:[%s608_s1 + $0x46] sm:$0x4] %vm3_vm3, %v223_v12   ;;  %227 = vst.msk [vmem:[%s608_s1 + $0x65] sm:$0x8] %vm3_vm3, %v223_v12  }
   0xc   :  { %228 = vst.msk [vmem:[%s608_s1 + $0x84] sm:$0x10] %vm3_vm3, %v223_v12   ;;  %229 = vst.msk [vmem:[%s608_s1 + $0xa3] sm:$0x20] %vm3_vm3, %v223_v12  }
   0xd   :  { %232 = vst.msk [vmem:[%s608_s1 + $0x36] sm:$0x2] %vm3_vm3, %v230_v13   ;;  %233 = vst.msk [vmem:[%s608_s1 + $0x55] sm:$0x4] %vm3_vm3, %v230_v13  }
   0xe   :  { %234 = vst.msk [vmem:[%s608_s1 + $0x74] sm:$0x8] %vm3_vm3, %v230_v13   ;;  %235 = vst.msk [vmem:[%s608_s1 + $0x93] sm:$0x10] %vm3_vm3, %v230_v13  }
   0xf   :  { %127 = vrot.lane.b32.xlu0 %v256_v10, %s303_s25  ;;  %135 = vrot.lane.b32.xlu1 %v92_v8, %s304_s26  ;;  %236 = vst.msk [vmem:[%s608_s1 + $0xb2] sm:$0x20] %vm3_vm3, %v230_v13  }
  0x13   :  { %148 = vrot.lane.b32.xlu0 %v256_v10, %s304_s26  ;;  %s305_s26 = smov 48  }
  0x14   :  { %156 = vrot.lane.b32.xlu1 %v92_v8, %s305_s26 }
  0x17   :  { %169 = vrot.lane.b32.xlu0 %v256_v10, %s305_s26 }
  0x18   :  { %177 = vrot.lane.b32.xlu1 %v92_v8, %s306_s10 }
  0x1b   :  { %190 = vrot.lane.b32.xlu0 %v256_v10, %s306_s10 }
  0x1c   :  { %198 = vrot.lane.b32.xlu1 %v92_v8, %s307_s11 }
  0x1f   :  { %211 = vrot.lane.b32.xlu0 %v256_v10, %s307_s11 }
  0x75   :  { %v73_v14 = vpop.permute.xlu0 %72   ;;  %v86_v15 = vpop.permute.xlu1 %85  }
  0x76   :  { %245 = vst.msk [vmem:[%s608_s1 + $0x61] ss:$15 sm:$0x3] %vm3_vm3, %v73_v14   ;;  %246 = vst.msk [vmem:[%s608_s1 + $0x6] ss:$41 sm:$0xc] %vm3_vm3, %v73_v14  }
  0x77   :  { %247 = vst.msk [vmem:[%s608_s1 + $0xf0] ss:$-24 sm:$0x30] %vm3_vm3, %v73_v14   ;;  %248 = vst.msk [vmem:[%s608_s1 + $0x47] ss:$15 sm:$0xc0] %vm3_vm3, %v73_v14  }
  0x78   :  { %250 = vst.msk [vmem:[%s608_s1 + $0x98] sm:$0x1] %vm3_vm3, %v86_v15   ;;  %251 = vst.msk [vmem:[%s608_s1 + $0xb7] sm:$0x2] %vm3_vm3, %v86_v15  }
  0x79   :  { %v56_v16 = vpop.permute.xlu0 %55   ;;  %v94_v17 = vpop.permute.xlu1 %93  }
  0x7a   :  { %239 = vst.msk [vmem:[%s608_s1 + $0x1] ss:$15 sm:$0x3] %vm3_vm3, %v56_v16   ;;  %240 = vst.msk [vmem:[%s608_s1 + $0x6] ss:$9 sm:$0xc] %vm3_vm3, %v56_v16  }
  0x7b   :  { %241 = vst.msk [vmem:[%s608_s1 + $0x10] ss:$8 sm:$0x30] %vm3_vm3, %v56_v16   ;;  %242 = vst.msk [vmem:[%s608_s1 - $0x19] ss:$15 sm:$0xc0] %vm3_vm3, %v56_v16  }
  0x7c   :  { %252 = vst.msk [vmem:[%s608_s1 + $0x2] ss:$15 sm:$0x3] %vm3_vm3, %v94_v17   ;;  %253 = vst.msk [vmem:[%s608_s1 + $0x4] ss:$15 sm:$0xc] %vm3_vm3, %v94_v17  }
  0x7d   :  { %254 = vst.msk [vmem:[%s608_s1 + $0x6] ss:$15 sm:$0x30] %vm3_vm3, %v94_v17   ;;  %255 = vst.msk [vmem:[%s608_s1 + $0x8] ss:$15 sm:$0xc0] %vm3_vm3, %v94_v17   ;;  %v107_v18 = vpop.permute.xlu0 %106   ;;  %v115_v19 = vpop.permute.xlu1 %114  }
  0x7e   :  { %257 = vst.msk [vmem:[%s608_s1 + $0x82] ss:$15 sm:$0x3] %vm3_vm3, %v107_v18   ;;  %258 = vst.msk [vmem:[%s608_s1 + $0x84] ss:$15 sm:$0xc] %vm3_vm3, %v107_v18  }
  0x7f   :  { %259 = vst.msk [vmem:[%s608_s1 + $0x3] ss:$15 sm:$0x3] %vm3_vm3, %v115_v19   ;;  %260 = vst.msk [vmem:[%s608_s1 + $0x5] ss:$15 sm:$0xc] %vm3_vm3, %v115_v19  }
  0x80   :  { %261 = vst.msk [vmem:[%s608_s1 + $0x7] ss:$15 sm:$0x30] %vm3_vm3, %v115_v19   ;;  %262 = vst.msk [vmem:[%s608_s1 + $0x9] ss:$15 sm:$0xc0] %vm3_vm3, %v115_v19  }
  0x81   :  { %v128_v20 = vpop.permute.xlu0 %127   ;;  %v136_v21 = vpop.permute.xlu1 %135  }
  0x82   :  { %264 = vst.msk [vmem:[%s608_s1 + $0x83] ss:$15 sm:$0x3] %vm3_vm3, %v128_v20   ;;  %265 = vst.msk [vmem:[%s608_s1 + $0x85] ss:$15 sm:$0xc] %vm3_vm3, %v128_v20  }
  0x83   :  { %266 = vst.msk [vmem:[%s608_s1 + $0x4] ss:$15 sm:$0x3] %vm3_vm3, %v136_v21   ;;  %267 = vst.msk [vmem:[%s608_s1 + $0x6] ss:$15 sm:$0xc] %vm3_vm3, %v136_v21  }
  0x84   :  { %268 = vst.msk [vmem:[%s608_s1 + $0x8] ss:$15 sm:$0x30] %vm3_vm3, %v136_v21   ;;  %269 = vst.msk [vmem:[%s608_s1 + $0xa] ss:$15 sm:$0xc0] %vm3_vm3, %v136_v21  }
  0x85   :  { %v149_v22 = vpop.permute.xlu0 %148  }
  0x86   :  { %v157_v23 = vpop.permute.xlu1 %156   ;;  %271 = vst.msk [vmem:[%s608_s1 + $0x84] ss:$15 sm:$0x3] %vm3_vm3, %v149_v22   ;;  %272 = vst.msk [vmem:[%s608_s1 + $0x86] ss:$15 sm:$0xc] %vm3_vm3, %v149_v22  }
  0x87   :  { %273 = vst.msk [vmem:[%s608_s1 + $0x5] ss:$15 sm:$0x3] %vm3_vm3, %v157_v23   ;;  %274 = vst.msk [vmem:[%s608_s1 + $0x7] ss:$15 sm:$0xc] %vm3_vm3, %v157_v23  }
  0x88   :  { %275 = vst.msk [vmem:[%s608_s1 + $0x9] ss:$15 sm:$0x30] %vm3_vm3, %v157_v23   ;;  %276 = vst.msk [vmem:[%s608_s1 + $0xb] ss:$15 sm:$0xc0] %vm3_vm3, %v157_v23  }
  0x89   :  { %v170_v24 = vpop.permute.xlu0 %169  }
  0x8a   :  { %v178_v25 = vpop.permute.xlu1 %177   ;;  %278 = vst.msk [vmem:[%s608_s1 + $0x85] ss:$15 sm:$0x3] %vm3_vm3, %v170_v24   ;;  %279 = vst.msk [vmem:[%s608_s1 + $0x87] ss:$15 sm:$0xc] %vm3_vm3, %v170_v24  }
  0x8b   :  { %280 = vst.msk [vmem:[%s608_s1 + $0x6] ss:$15 sm:$0x3] %vm3_vm3, %v178_v25   ;;  %281 = vst.msk [vmem:[%s608_s1 + $0x8] ss:$15 sm:$0xc] %vm3_vm3, %v178_v25  }
  0x8c   :  { %282 = vst.msk [vmem:[%s608_s1 + $0xa] ss:$15 sm:$0x30] %vm3_vm3, %v178_v25   ;;  %283 = vst.msk [vmem:[%s608_s1 + $0xc] ss:$15 sm:$0xc0] %vm3_vm3, %v178_v25  }
  0x8d   :  { %v191_v26 = vpop.permute.xlu0 %190  }
  0x8e   :  { %v199_v27 = vpop.permute.xlu1 %198   ;;  %285 = vst.msk [vmem:[%s608_s1 + $0x86] ss:$15 sm:$0x3] %vm3_vm3, %v191_v26   ;;  %286 = vst.msk [vmem:[%s608_s1 + $0x88] ss:$15 sm:$0xc] %vm3_vm3, %v191_v26  }
  0x8f   :  { %287 = vst.msk [vmem:[%s608_s1 + $0x7] ss:$15 sm:$0x3] %vm3_vm3, %v199_v27   ;;  %288 = vst.msk [vmem:[%s608_s1 + $0x9] ss:$15 sm:$0xc] %vm3_vm3, %v199_v27  }
  0x90   :  { %289 = vst.msk [vmem:[%s608_s1 + $0xb] ss:$15 sm:$0x30] %vm3_vm3, %v199_v27   ;;  %290 = vst.msk [vmem:[%s608_s1 + $0xd] ss:$15 sm:$0xc0] %vm3_vm3, %v199_v27  }
  0x91   :  { %v212_v28 = vpop.permute.xlu0 %211  }
  0x92   :  { %292 = vst.msk [vmem:[%s608_s1 + $0x87] ss:$15 sm:$0x3] %vm3_vm3, %v212_v28   ;;  %293 = vst.msk [vmem:[%s608_s1 + $0x89] ss:$15 sm:$0xc] %vm3_vm3, %v212_v28  }

// kernel: reverse.5
= control target key start
LH: loop header
LB: loop body
LE: loop exit
PB: predicated region body
PF: predicated region fallthrough
CT: control target
= control target key end

     0   :  { %v2_v0 = vlaneseq  ;;  %s328_s0 = inlined_call_operand.vmem [shape: f32[2,3,16,7], index: 0, kind: input, shape index: {}]   ;;  %s329_s1 = inlined_call_operand.vmem [shape: f32[2,3,16,7], index: 1, kind: output, shape index: {}]  }
   0x1   :  { %v58_v2 = vld [vmem:[%s328_s0 + $0x10] sm:$0xff]  ;;  %v54_v3 = vld [vmem:[%s328_s0] sm:$0xff]  ;;  %v60_v4 = vld [vmem:[%s328_s0 + $0x18] sm:$0xff] }
   0x2   :  { %v3_v1 = vsub.s32 6, %v2_v0  ;;  %v56_v5 = vld [vmem:[%s328_s0 + $0x8] sm:$0xff]  ;;  %v62_v7 = vld [vmem:[%s328_s0 + $0x20] sm:$0xff]  ;;  %v68_v8 = vld [vmem:[%s328_s0 + $0x38] sm:$0xff] }
   0x3   :  { %v64_v6 = vld [vmem:[%s328_s0 + $0x28] sm:$0xff]  ;;  %v66_v9 = vld [vmem:[%s328_s0 + $0x30] sm:$0xff]  ;;  %v70_v11 = vld [vmem:[%s328_s0 + $0x40] sm:$0xff] }
   0x4   :  { %4 = vset.pattern.permute.xlu0 %v3_v1  ;;  %245 = vset.pattern.permute.xlu1 %v3_v1  ;;  %v72_v10 = vld [vmem:[%s328_s0 + $0x48] sm:$0xff]  ;;  %v76_v12 = vld [vmem:[%s328_s0 + $0x58] sm:$0xff]  ;;  %v74_v13 = vld [vmem:[%s328_s0 + $0x50] sm:$0xff] }
   0x5   :  { %94 = vperm.xlu1 %245, %v58_v2   ;;  %82 = vperm.xlu0 %4, %v54_v3  }
   0x9   :  { %100 = vperm.xlu1 %245, %v60_v4   ;;  %88 = vperm.xlu0 %4, %v56_v5  }
   0xd   :  { %112 = vperm.xlu1 %245, %v64_v6   ;;  %106 = vperm.xlu0 %4, %v62_v7  }
  0x11   :  { %124 = vperm.xlu1 %245, %v68_v8   ;;  %118 = vperm.xlu0 %4, %v66_v9  }
  0x15   :  { %136 = vperm.xlu1 %245, %v72_v10   ;;  %130 = vperm.xlu0 %4, %v70_v11  }
  0x19   :  { %148 = vperm.xlu1 %245, %v76_v12   ;;  %142 = vperm.xlu0 %4, %v74_v13  }
  0x84   :  { %v95_v14 = vpop.permute.xlu1 %94  ;;  %v83_v15 = vpop.permute.xlu0 %82 }
  0x85   :  { %205 = vst [vmem:[%s329_s1 + $0x10] sm:$0xff] %v95_v14  ;;  %201 = vst [vmem:[%s329_s1] sm:$0xff] %v83_v15 }
  0x88   :  { %v101_v16 = vpop.permute.xlu1 %100  ;;  %v89_v17 = vpop.permute.xlu0 %88 }
  0x89   :  { %207 = vst [vmem:[%s329_s1 + $0x18] sm:$0xff] %v101_v16  ;;  %203 = vst [vmem:[%s329_s1 + $0x8] sm:$0xff] %v89_v17 }
  0x8c   :  { %v113_v18 = vpop.permute.xlu1 %112  ;;  %v107_v19 = vpop.permute.xlu0 %106 }
  0x8d   :  { %211 = vst [vmem:[%s329_s1 + $0x28] sm:$0xff] %v113_v18  ;;  %209 = vst [vmem:[%s329_s1 + $0x20] sm:$0xff] %v107_v19 }
  0x90   :  { %v125_v20 = vpop.permute.xlu1 %124  ;;  %v119_v21 = vpop.permute.xlu0 %118 }
  0x91   :  { %215 = vst [vmem:[%s329_s1 + $0x38] sm:$0xff] %v125_v20  ;;  %213 = vst [vmem:[%s329_s1 + $0x30] sm:$0xff] %v119_v21 }
  0x94   :  { %v137_v22 = vpop.permute.xlu1 %136  ;;  %v131_v23 = vpop.permute.xlu0 %130 }
  0x95   :  { %219 = vst [vmem:[%s329_s1 + $0x48] sm:$0xff] %v137_v22  ;;  %217 = vst [vmem:[%s329_s1 + $0x40] sm:$0xff] %v131_v23 }
  0x98   :  { %v149_v24 = vpop.permute.xlu1 %148  ;;  %v143_v25 = vpop.permute.xlu0 %142 }
  0x99   :  { %223 = vst [vmem:[%s329_s1 + $0x58] sm:$0xff] %v149_v24  ;;  %221 = vst [vmem:[%s329_s1 + $0x50] sm:$0xff] %v143_v25 }

// kernel: _lambda_.2
= control target key start
LH: loop header
LB: loop body
LE: loop exit
PB: predicated region body
PF: predicated region fallthrough
CT: control target
= control target key end

     0   :  { %s625_s12 = smov 0   ;;  %s627_s13 = smov 0   ;;  %s669_s0 = inlined_call_operand.vmem [shape: bf16[2,8,24], index: 0, kind: input, shape index: {}]   ;;  %s670_s1 = inlined_call_operand.vmem [shape: bf16[2,24,384], index: 1, kind: input, shape index: {}]   ;;  %s671_s2 = inlined_call_operand.vmem [shape: f32[2,1,8,1], index: 2, kind: output, shape index: {0}]   ;;  %s672_s3 = inlined_call_operand.vmem [shape: f32[2,1,8,1], index: 3, kind: output, shape index: {1}]  }
   0x1   :  { %s629_s14 = smov 0  }
   0x2 LB: > { %s26_s15 = sadd.s32 1, %s596_s13  ;;  %p516_p0 = scmp.ge.s32.totalorder %s600_s14, 1  ;;  %s600_s14 = sphi %s629_s14, %s14_s14   ;;  %s596_s13 = sphi %s627_s13, %s674_s13   ;;  %s592_s12 = sphi %s625_s12, %s673_s12  }
   0x3   : > { %p28_p1 = scmp.ge.s32.totalorder %s26_s15, 2  ;;  %p172_p2 = scmp.lt.s32.totalorder %s600_s14, 3 }
   0x5   : > { %s676_s15 = smov (%p28_p1, %s26_s15), 0  ;;  %p173_p3 = pnand %p516_p0, %p172_p2 }
   0x6   : > { %p213_p4 = scmp.lt.s32.totalorder (!%p173_p3), %s592_s12, 1  ;;  %v602_v0 = vmov (!%p173_p3), 0.0   ;;  %v603_v1 = vmov (!%p173_p3), 0   ;;  %vm604_vm0 = vmmov (!%p173_p3), 0   ;;  %vm277_vm1 = vcmask (!%p173_p3), 1043456  }
   0x7   : > { %176 = sbr.rel (%p173_p3) target bundleno = 391 (0x187), region = 28  ;;  %535 = vmatprep.subr.bf16.mxu1 (!%p173_p3), %v602_v0  ;;  %319 = vmatprep.mubr.bf16.mxu0 (!%p173_p3), %v603_v1  ;;  %vm273_vm2 = vcmask (!%p173_p3), 195584   ;;  %vm372_vm3 = vcmask (!%p173_p3), 7168  }
   0x8   : > { %539 = vmatprep.mubr.msk.bf16.mxu1 (!%p173_p3), %vm604_vm0, %v602_v0 }
   0xe   : > { %s678_s12 = smov (!%p213_p4, %s592_s12), 1 }
   0xf   : > { %s543_s16 = smul.u32 36, %s678_s12  ;;  %s517_s20 = sshll.u32 %s678_s12, 2 }
  0x10   : > { %s216_s23 = scalar_lea.vmem %s669_s0, %s517_s20  ;;  %s519_s24 = sshll.u32 %s678_s12, 3 }
  0x11   : > { %s225_s19 = scalar_lea.vmem %s670_s1, %s543_s16  ;;  %v242_v11 = vld [vmem:[%s216_s23] sm:$0xf]  ;;  %s233_s27 = scalar_lea.vmem %s671_s2, %s519_s24 }
  0x12   : > { %v571_v2 = vld [vmem:[%s225_s19 + $0x4] ss:$12 sps:$4 sm:$0xff]   ;;  %v573_v3 = vld [vmem:[%s225_s19] ss:$12 sps:$4 sm:$0xff]   ;;  %v574_v4 = vld [vmem:[%s225_s19 + $0x8] ss:$12 sps:$4 sm:$0xff]   ;;  %s240_s30 = scalar_lea.vmem %s672_s3, %s519_s24 }
  0x13   : > { %287 = vmatprep.subr.bf16.mxu0 %v571_v2  ;;  %v247_v5 = vld [vmem:[%s225_s19 + $0x18] sm:$0xff]  ;;  %v577_v8 = vld [vmem:[%s225_s19 + $0x20] ss:$0 sps:$4 sm:$0xff]   ;;  %536 = vmatpush3.bf16.msra.mxu1 %v574_v4 }
  0x14   : > { %288 = vmatpush1.bf16.msra.mxu0 %v573_v3  ;;  %v525_v6 = vcombine.high %v247_v5, %v247_v5  ;;  %v524_v7 = vcombine.low %v247_v5, %v247_v5  ;;  %537 = vmatprep.subr.bf16.mxu1 %v602_v0  ;;  %v285_v10 = vsel %vm277_vm1, %v577_v8, 0 }
  0x16   : > { %527 = vmatprep.subr.msk.bf16.mxu0 %vm277_vm1, %v525_v6  ;;  %v279_v9 = vsel %vm277_vm1, %v524_v7, 0 }
  0x17   : > { %538 = vmatpush3.bf16.msra.mxu1 %v285_v10 }
  0x18   : > { %290 = vmatpush1.bf16.msra.mxu0 %v279_v9 }
  0x1a   : > { %540 = vmatmul.mubr.msk.bf16.vlgmr.msra.gmra.mrb[0].mxu1 %vm273_vm2, %v242_v11 }
  0x1b   : > { %528 = vmatmul.mubr.msk.bf16.vlgmr.msra.gmra.mrb[0].mxu0 %vm273_vm2, %v242_v11 }
  0xed   : > { %v362_v14 = vpop.f32.mrb[0].mxu1 }
  0xee   : > { %v321_v12 = vpop.f32.mrb[0].mxu0  ;;  %v376_v16 = vmul.f32 %v362_v14, %v362_v14  ;;  %v541_v19 = vpop.f32.mrb[1].mxu1 }
  0xef   : > { %v374_v13 = vmul.f32 %v321_v12, %v321_v12  ;;  %v323_v15 = vpop.f32.mrb[1].mxu0  ;;  %v365_v21 = vpop.f32.mrb[2].mxu1 }
  0xf0   : > { %v368_v17 = vadd.f32 %v323_v15, %v321_v12  ;;  %v375_v18 = vmul.f32 %v323_v15, %v323_v15  ;;  %v325_v20 = vpop.f32.mrb[2].mxu0  ;;  %v542_v23 = vpop.f32.mrb[3].mxu1 }
  0xf1   : > { %v326_v22 = vpop.f32.mrb[3].mxu0 }
  0xf2   : > { %v369_v24 = vadd.f32 %v368_v17, %v362_v14  ;;  %v377_v25 = vadd.f32 %v375_v18, %v374_v13 }
  0xf4   : > { %370 = vadd.xlane.f32.xlu0 %v369_v24  ;;  %v378_v26 = vadd.f32 %v377_v25, %v376_v16 }
  0xf8   : > { %379 = vadd.xlane.f32.xlu0 %v378_v26 }
 0x181   : > { %v371_v27 = vpop.xlane.xlu0 %370 }
 0x182   : > { %373 = vst.msk [vmem:[%s233_s27] sm:$0xff] %vm372_vm3, %v371_v27 }
 0x185   : > { %v380_v28 = vpop.xlane.xlu0 %379 }
 0x186   : > { %381 = vst.msk [vmem:[%s240_s30] sm:$0xff] %vm372_vm3, %v380_v28 }
 0x187 PF: > { %s14_s14 = sadd.s32 1, %s600_s14   ;;  %s673_s12 = smov %s596_s13 }
 0x188   : > { %p11_p5 = scmp.ge.s32.totalorder %s14_s14, 4   ;;  %s674_s13 = smov %s676_s15 }
 0x18a   :  { %13 = sbr.rel (!%p11_p5) target bundleno = 2 (0x2), region = 73 }

// kernel: _lambda_.3
= control target key start
LH: loop header
LB: loop body
LE: loop exit
PB: predicated region body
PF: predicated region fallthrough
CT: control target
= control target key end

     0   :  { %s683_s15 = smov 0   ;;  %s685_s16 = smov 0   ;;  %s731_s0 = inlined_call_operand.vmem [shape: bf16[2,8,24], index: 0, kind: input, shape index: {}]   ;;  %s732_s1 = inlined_call_operand.vmem [shape: bf16[2,24,384], index: 1, kind: input, shape index: {}]   ;;  %s733_s2 = inlined_call_operand.vmem [shape: f32[2,8,1], index: 2, kind: input, shape index: {}]   ;;  %s734_s3 = inlined_call_operand.vmem [shape: f32[2,8,1], index: 3, kind: input, shape index: {}]   ;;  %s735_s4 = inlined_call_operand.vmem [shape: f32[2,8,384], index: 4, kind: output, shape index: {}]  }
   0x1   :  { %s687_s17 = smov 0  }
   0x2 LB: > { %s26_s18 = sadd.s32 1, %s649_s16  ;;  %p566_p0 = scmp.ge.s32.totalorder %s653_s17, 1  ;;  %s653_s17 = sphi %s687_s17, %s14_s17   ;;  %s649_s16 = sphi %s685_s16, %s737_s16   ;;  %s645_s15 = sphi %s683_s15, %s736_s15  }
   0x3   : > { %p28_p1 = scmp.ge.s32.totalorder %s26_s18, 2  ;;  %p210_p2 = scmp.lt.s32.totalorder %s653_s17, 3 }
   0x5   : > { %s739_s18 = smov (%p28_p1, %s26_s18), 0  ;;  %p211_p3 = pnand %p566_p0, %p210_p2 }
   0x6   : > { %p256_p4 = scmp.lt.s32.totalorder (!%p211_p3), %s645_s15, 1  ;;  %v655_v0 = vmov (!%p211_p3), 0.0   ;;  %vm656_vm0 = vmmov (!%p211_p3), 0   ;;  %v657_v1 = vmov (!%p211_p3), 0   ;;  %vm324_vm1 = vcmask (!%p211_p3), 1043456  }
   0x7   : > { %214 = sbr.rel (%p211_p3) target bundleno = 247 (0xf7), region = 36  ;;  %586 = vmatprep.subr.bf16.mxu1 (!%p211_p3), %v655_v0  ;;  %590 = vmatprep.mubr.msk.bf16.mxu1 (!%p211_p3), %vm656_vm0, %v655_v0  ;;  %vm320_vm2 = vcmask (!%p211_p3), 195584  }
   0x8   : > { %366 = vmatprep.mubr.bf16.mxu0 (!%p211_p3), %v657_v1  ;;  %623 = vset.pattern.permute.xlu0 (!%p211_p3), %v657_v1 }
   0xe   : > { %s741_s15 = smov (!%p256_p4, %s645_s15), 1 }
   0xf   : > { %s594_s19 = smul.u32 36, %s741_s15  ;;  %s569_s20 = sshll.u32 %s741_s15, 3 }
  0x10   : > { %s567_s24 = sshll.u32 %s741_s15, 2  ;;  %s273_s27 = scalar_lea.vmem %s733_s2, %s569_s20 }
  0x11   : > { %s268_s23 = scalar_lea.vmem %s732_s1, %s594_s19  ;;  %v415_v9 = vld [vmem:[%s273_s27] sm:$0xff]  ;;  %s277_s30 = scalar_lea.vmem %s734_s3, %s569_s20 }
  0x12   : > { %v624_v2 = vld [vmem:[%s268_s23 + $0x4] ss:$12 sps:$4 sm:$0xff]   ;;  %v626_v3 = vld [vmem:[%s268_s23 + $0x8] ss:$12 sps:$4 sm:$0xff]   ;;  %v627_v4 = vld [vmem:[%s268_s23] ss:$12 sps:$4 sm:$0xff]   ;;  %s259_s7 = scalar_lea.vmem %s731_s0, %s567_s24  ;;  %418 = vperm.xlu0 %623, %v415_v9  }
  0x13   : > { %334 = vmatprep.subr.bf16.mxu0 %v624_v2  ;;  %v294_v5 = vld [vmem:[%s268_s23 + $0x18] sm:$0xff]  ;;  %587 = vmatpush3.bf16.msra.mxu1 %v626_v3  ;;  %v629_v7 = vld [vmem:[%s268_s23 + $0x20] ss:$0 sps:$4 sm:$0xff]   ;;  %s595_s8 = smul.u32 24, %s741_s15 }
  0x14   : > { %v576_v6 = vcombine.high %v294_v5, %v294_v5  ;;  %v575_v8 = vcombine.low %v294_v5, %v294_v5  ;;  %335 = vmatpush1.bf16.msra.mxu0 %v627_v4  ;;  %588 = vmatprep.subr.bf16.mxu1 %v655_v0  ;;  %v332_v10 = vsel %vm324_vm1, %v629_v7, 0  ;;  %v424_v12 = vld [vmem:[%s277_s30] sm:$0xff] }
  0x15   : > { %v289_v13 = vld [vmem:[%s259_s7] sm:$0xf]  ;;  %s286_s11 = scalar_lea.vmem %s735_s4, %s595_s8 }
  0x16   : > { %578 = vmatprep.subr.msk.bf16.mxu0 %vm324_vm1, %v576_v6  ;;  %v326_v11 = vsel %vm324_vm1, %v575_v8, 0  ;;  %427 = vperm.xlu0 %623, %v424_v12  }
  0x17   : > { %589 = vmatpush3.bf16.msra.mxu1 %v332_v10 }
  0x18   : > { %337 = vmatpush1.bf16.msra.mxu0 %v326_v11 }
  0x1a   : > { %591 = vmatmul.mubr.msk.bf16.vlgmr.msra.gmra.mrb[0].mxu1 %vm320_vm2, %v289_v13 }
  0x1b   : > { %579 = vmatmul.mubr.msk.bf16.vlgmr.msra.gmra.mrb[0].mxu0 %vm320_vm2, %v289_v13 }
  0x91   : > { %v419_v14 = vpop.permute.xlu0 %418 }
  0x95   : > { %v428_v15 = vpop.permute.xlu0 %427 }
  0xed   : > { %v409_v16 = vpop.f32.mrb[0].mxu1 }
  0xee   : > { %v423_v17 = vmul.f32 %v419_v14, %v409_v16  ;;  %v368_v18 = vpop.f32.mrb[0].mxu0  ;;  %v592_v19 = vpop.f32.mrb[1].mxu1 }
  0xef   : > { %v421_v20 = vmul.f32 %v419_v14, %v368_v18  ;;  %v370_v21 = vpop.f32.mrb[1].mxu0  ;;  %v412_v22 = vpop.f32.mrb[2].mxu1 }
  0xf0   : > { %v432_v23 = vadd.f32 %v428_v15, %v423_v17  ;;  %v422_v24 = vmul.f32 %v419_v14, %v370_v21  ;;  %v372_v25 = vpop.f32.mrb[2].mxu0  ;;  %v593_v26 = vpop.f32.mrb[3].mxu1 }
  0xf1   : > { %v430_v27 = vadd.f32 %v428_v15, %v421_v20  ;;  %v373_v28 = vpop.f32.mrb[3].mxu0 }
  0xf2   : > { %v435_v29 = vmax.f32 %v432_v23, 0.0  ;;  %v431_v30 = vadd.f32 %v428_v15, %v422_v24 }
  0xf3   : > { %v433_v31 = vmax.f32 %v430_v27, 0.0 }
  0xf4   : > { %438 = vst [vmem:[%s286_s11 + $0x10] sm:$0xff] %v435_v29  ;;  %v434_v32 = vmax.f32 %v431_v30, 0.0 }
  0xf5   : > { %436 = vst [vmem:[%s286_s11] sm:$0xff] %v433_v31 }
  0xf6   : > { %437 = vst [vmem:[%s286_s11 + $0x8] sm:$0xff] %v434_v32 }
  0xf7 PF: > { %s14_s17 = sadd.s32 1, %s653_s17   ;;  %s736_s15 = smov %s649_s16 }
  0xf8   : > { %p11_p5 = scmp.ge.s32.totalorder %s14_s17, 4   ;;  %s737_s16 = smov %s739_s18 }
  0xfa   :  { %13 = sbr.rel (!%p11_p5) target bundleno = 2 (0x2), region = 75 }

</bundles_post_ra>
